<compile_context>
chip_gen: v6e
topology: v6e:2x2x1
jax: 0.10.0
libtpu: 0.0.40
codegen_flags: <defaults>
</compile_context>

<pallas_src>
import jax
import jax.numpy as jnp
from jax.experimental import pallas as pl
from jax.experimental.pallas import tpu as pltpu

# Layer widths matching the PyTorch module.
HIDDEN = (128, 64, 32, 16, 8, 1)
LANE = 128


def _round_up(x, m):
    return (x + m - 1) // m * m


def _make_fcnn_kernel(layer_rows, num_layers):
    """layer_rows: static per-layer row counts (offsets) inside the packed weight slab."""

    def kernel(x_ref, w_ref, b_ref, o_ref):
        # x_ref: (TB, IN_PAD) f32   w_ref: (sum(layer_rows), 128) bf16
        # b_ref: (num_layers, 128) f32   o_ref: (TB, 1) f32
        h = x_ref[...].astype(jnp.float32)
        b_all = b_ref[...]                                        # (num_layers, 128) f32
        row = 0
        for li, rows in enumerate(layer_rows):                    # static, unrolled
            w = w_ref[row:row + rows, :]                          # static sublane-aligned slice
            acc = jnp.dot(h.astype(jnp.bfloat16), w,              # bf16 MXU operands,
                          preferred_element_type=jnp.float32)     # f32 accumulate
            acc = acc + b_all[li][None, :]                        # f32 bias add (VPU)
            if li < num_layers - 1:
                # ReLU on the full 128-lane vreg; zero-padded columns stay exactly 0.
                h = jnp.maximum(acc, 0.0)
            else:
                h = acc
            row += rows
        # Only lane 0 of the final layer is real output -> single masked store at the end.
        o_ref[...] = h[:, :1].astype(o_ref.dtype)

    return kernel


def pack_params(params, input_size):
    """Pack (W, b) pairs into one lane-dense bf16 weight slab + one f32 bias slab."""
    in_pad = _round_up(max(input_size, 1), 8)
    w_blocks, b_rows, layer_rows = [], [], []
    rows, real_in = in_pad, input_size
    for (w, b) in params:                      # w: (in, out), b: (1, out)
        out = w.shape[1]
        wp = jnp.zeros((rows, LANE), jnp.float32).at[:real_in, :out].set(w)
        bp = jnp.zeros((LANE,), jnp.float32).at[:out].set(b.reshape(-1))
        w_blocks.append(wp)
        b_rows.append(bp)
        layer_rows.append(rows)
        real_in, rows = out, LANE              # hidden activations are kept 128-lane padded
    w_slab = jnp.concatenate(w_blocks, axis=0).astype(jnp.bfloat16)
    b_slab = jnp.stack(b_rows, axis=0)         # (num_layers, 128) f32
    return w_slab, b_slab, tuple(layer_rows), in_pad


def fcnn_forward(x, params, *, batch_tile=256):
    """x: (B, input_size) f32.  params: list of (W, b) with W=(in,out), b=(1,out)."""
    B, input_size = x.shape
    w_slab, b_slab, layer_rows, in_pad = pack_params(params, input_size)

    x = x.astype(jnp.float32)
    if in_pad != input_size:
        x = jnp.pad(x, ((0, 0), (0, in_pad - input_size)))

    tb = min(batch_tile, _round_up(B, 8))      # multiple of 8 sublanes; ~256 for big batches
    grid = (pl.cdiv(B, tb),)

    num_layers = len(params)
    kernel = _make_fcnn_kernel(layer_rows, num_layers)

    dims = [input_size] + [w.shape[1] for (w, _) in params]
    flops = 2 * B * sum(a * b for a, b in zip(dims[:-1], dims[1:]))
    bytes_accessed = x.size * 4 + w_slab.size * 2 + b_slab.size * 4 + B * dims[-1] * 4

    return pl.pallas_call(
        kernel,
        out_shape=jax.ShapeDtypeStruct((B, dims[-1]), jnp.float32),
        grid=grid,
        in_specs=[
            pl.BlockSpec((tb, in_pad), lambda i: (i, 0)),      # x tiles: pipelined over batch
            pl.BlockSpec(w_slab.shape, lambda i: (0, 0)),      # packed weights: VMEM-resident
            pl.BlockSpec(b_slab.shape, lambda i: (0, 0)),      # packed biases: VMEM-resident
        ],
        out_specs=pl.BlockSpec((tb, dims[-1]), lambda i: (i, 0)),
        compiler_params=pltpu.CompilerParams(
            dimension_semantics=("parallel",)),                # shard batch across TCs (v7x)
        cost_estimate=pl.CostEstimate(
            flops=flops, transcendentals=0, bytes_accessed=bytes_accessed),
    )(x, w_slab, b_slab)


def init_params(input_size, key):
    """Deterministic init mimicking torch.nn.Linear default:
    U(-1/sqrt(fan_in), 1/sqrt(fan_in)) for both weight and bias.
    (Weights stored as (in, out) = transpose of PyTorch's (out, in).)"""
    params = []
    fan_in = input_size
    for out_dim in HIDDEN:
        key, kw, kb = jax.random.split(key, 3)
        bound = 1.0 / jnp.sqrt(jnp.float32(fan_in))
        w = jax.random.uniform(kw, (fan_in, out_dim), jnp.float32, -bound, bound)
        b = jax.random.uniform(kb, (1, out_dim), jnp.float32, -bound, bound)
        params.append((w, b))
        fan_in = out_dim
    return params


def reference_forward(x, params):
    """Plain-JAX reference of the same eval-mode forward, using the same bf16 matmul
    operands / f32 accumulate as the kernel."""
    h = x.astype(jnp.float32)
    n = len(params)
    for i, (w, b) in enumerate(params):
        acc = jnp.dot(h.astype(jnp.bfloat16), w.astype(jnp.bfloat16),
                      preferred_element_type=jnp.float32) + b
        h = jnp.maximum(acc, 0.0) if i < n - 1 else acc
    return h


if __name__ == "__main__":
    key = jax.random.PRNGKey(0)
    key, kx, kp = jax.random.split(key, 3)

    batch = 32
    input_size = 32  # small feature dim consistent with "hidden=32"-style inputs

    x = jax.random.normal(kx, (batch, input_size), dtype=jnp.float32)
    params = init_params(input_size, kp)

    # batch_tile=8 here just to exercise the multi-step batch grid at small shapes;
    # production default is 256 rows per tile.
    out = fcnn_forward(x, params, batch_tile=8)
    out = jax.block_until_ready(out)

    ref = reference_forward(x, params)
    assert out.shape == (batch, 1), out.shape
    assert jnp.allclose(out, ref, atol=1e-4, rtol=1e-4), float(jnp.max(jnp.abs(out - ref)))

    print("KERNEL_OK")
</pallas_src>

<mosaic_0001>
module attributes {stable_mosaic.version = 11 : i64} {
  func.func @kernel(%arg0: i32, %arg1: memref<8x32xf32, #tpu.memory_space<vmem>>, %arg2: memref<672x128xbf16, #tpu.memory_space<vmem>>, %arg3: memref<6x128xf32, #tpu.memory_space<vmem>>, %arg4: memref<8x1xf32, #tpu.memory_space<vmem>>) attributes {dimension_semantics = [#tpu.dimension_semantics<parallel>], iteration_bounds = array<i64: 4>, scalar_prefetch = 0 : i64, scratch_operands = 0 : i64, tpu.core_type = #tpu.core_type<tc>, window_params = [{transform_indices = @transform_0, window_bounds = array<i64: 8, 32>}, {pipeline_mode = #tpu.pipeline_mode<synchronous>, transform_indices = @transform_1, window_bounds = array<i64: 672, 128>}, {pipeline_mode = #tpu.pipeline_mode<synchronous>, transform_indices = @transform_2, window_bounds = array<i64: 6, 128>}, {transform_indices = @transform_3, window_bounds = array<i64: 8, 1>}]} {
    %c0 = arith.constant 0 : index
    %c0_0 = arith.constant 0 : index
    %0 = vector.load %arg1[%c0, %c0_0] : memref<8x32xf32, #tpu.memory_space<vmem>>, vector<8x32xf32>
    %c0_1 = arith.constant 0 : index
    %c0_2 = arith.constant 0 : index
    %1 = vector.load %arg3[%c0_1, %c0_2] : memref<6x128xf32, #tpu.memory_space<vmem>>, vector<6x128xf32>
    %c0_3 = arith.constant 0 : index
    %c0_4 = arith.constant 0 : index
    %2 = vector.load %arg2[%c0_3, %c0_4] : memref<672x128xbf16, #tpu.memory_space<vmem>>, vector<32x128xbf16>
    %3 = arith.truncf %0 : vector<8x32xf32> to vector<8x32xbf16>
    %cst = arith.constant dense<0.000000e+00> : vector<8x128xf32>
    %4 = tpu.matmul %3, %2, %cst {dimension_numbers = #tpu.dot_dimension_numbers<[1], [0], [0], [1], [0, 0, 1, 1], [], []>} : vector<8x32xbf16>, vector<32x128xbf16>, vector<8x128xf32> -> vector<8x128xf32>
    %5 = vector.extract_strided_slice %1 {offsets = [0, 0], sizes = [1, 128], strides = [1, 1]} : vector<6x128xf32> to vector<1x128xf32>
    %6 = vector.shape_cast %5 : vector<1x128xf32> to vector<128xf32>
    %7 = vector.shape_cast %6 : vector<128xf32> to vector<1x128xf32>
    %8 = vector.broadcast %7 : vector<1x128xf32> to vector<8x128xf32>
    %9 = arith.addf %4, %8 : vector<8x128xf32>
    %cst_5 = arith.constant 0.000000e+00 : f32
    %10 = vector.broadcast %cst_5 : f32 to vector<8x128xf32>
    %11 = arith.maximumf %9, %10 : vector<8x128xf32>
    %c32 = arith.constant 32 : index
    %c0_6 = arith.constant 0 : index
    %12 = vector.load %arg2[%c32, %c0_6] : memref<672x128xbf16, #tpu.memory_space<vmem>>, vector<128x128xbf16>
    %13 = arith.truncf %11 : vector<8x128xf32> to vector<8x128xbf16>
    %cst_7 = arith.constant dense<0.000000e+00> : vector<8x128xf32>
    %14 = tpu.matmul %13, %12, %cst_7 {dimension_numbers = #tpu.dot_dimension_numbers<[1], [0], [0], [1], [0, 0, 1, 1], [], []>} : vector<8x128xbf16>, vector<128x128xbf16>, vector<8x128xf32> -> vector<8x128xf32>
    %15 = vector.extract_strided_slice %1 {offsets = [1, 0], sizes = [1, 128], strides = [1, 1]} : vector<6x128xf32> to vector<1x128xf32>
    %16 = vector.shape_cast %15 : vector<1x128xf32> to vector<128xf32>
    %17 = vector.shape_cast %16 : vector<128xf32> to vector<1x128xf32>
    %18 = vector.broadcast %17 : vector<1x128xf32> to vector<8x128xf32>
    %19 = arith.addf %14, %18 : vector<8x128xf32>
    %cst_8 = arith.constant 0.000000e+00 : f32
    %20 = vector.broadcast %cst_8 : f32 to vector<8x128xf32>
    %21 = arith.maximumf %19, %20 : vector<8x128xf32>
    %c160 = arith.constant 160 : index
    %c0_9 = arith.constant 0 : index
    %22 = vector.load %arg2[%c160, %c0_9] : memref<672x128xbf16, #tpu.memory_space<vmem>>, vector<128x128xbf16>
    %23 = arith.truncf %21 : vector<8x128xf32> to vector<8x128xbf16>
    %cst_10 = arith.constant dense<0.000000e+00> : vector<8x128xf32>
    %24 = tpu.matmul %23, %22, %cst_10 {dimension_numbers = #tpu.dot_dimension_numbers<[1], [0], [0], [1], [0, 0, 1, 1], [], []>} : vector<8x128xbf16>, vector<128x128xbf16>, vector<8x128xf32> -> vector<8x128xf32>
    %25 = vector.extract_strided_slice %1 {offsets = [2, 0], sizes = [1, 128], strides = [1, 1]} : vector<6x128xf32> to vector<1x128xf32>
    %26 = vector.shape_cast %25 : vector<1x128xf32> to vector<128xf32>
    %27 = vector.shape_cast %26 : vector<128xf32> to vector<1x128xf32>
    %28 = vector.broadcast %27 : vector<1x128xf32> to vector<8x128xf32>
    %29 = arith.addf %24, %28 : vector<8x128xf32>
    %cst_11 = arith.constant 0.000000e+00 : f32
    %30 = vector.broadcast %cst_11 : f32 to vector<8x128xf32>
    %31 = arith.maximumf %29, %30 : vector<8x128xf32>
    %c288 = arith.constant 288 : index
    %c0_12 = arith.constant 0 : index
    %32 = vector.load %arg2[%c288, %c0_12] : memref<672x128xbf16, #tpu.memory_space<vmem>>, vector<128x128xbf16>
    %33 = arith.truncf %31 : vector<8x128xf32> to vector<8x128xbf16>
    %cst_13 = arith.constant dense<0.000000e+00> : vector<8x128xf32>
    %34 = tpu.matmul %33, %32, %cst_13 {dimension_numbers = #tpu.dot_dimension_numbers<[1], [0], [0], [1], [0, 0, 1, 1], [], []>} : vector<8x128xbf16>, vector<128x128xbf16>, vector<8x128xf32> -> vector<8x128xf32>
    %35 = vector.extract_strided_slice %1 {offsets = [3, 0], sizes = [1, 128], strides = [1, 1]} : vector<6x128xf32> to vector<1x128xf32>
    %36 = vector.shape_cast %35 : vector<1x128xf32> to vector<128xf32>
    %37 = vector.shape_cast %36 : vector<128xf32> to vector<1x128xf32>
    %38 = vector.broadcast %37 : vector<1x128xf32> to vector<8x128xf32>
    %39 = arith.addf %34, %38 : vector<8x128xf32>
    %cst_14 = arith.constant 0.000000e+00 : f32
    %40 = vector.broadcast %cst_14 : f32 to vector<8x128xf32>
    %41 = arith.maximumf %39, %40 : vector<8x128xf32>
    %c416 = arith.constant 416 : index
    %c0_15 = arith.constant 0 : index
    %42 = vector.load %arg2[%c416, %c0_15] : memref<672x128xbf16, #tpu.memory_space<vmem>>, vector<128x128xbf16>
    %43 = arith.truncf %41 : vector<8x128xf32> to vector<8x128xbf16>
    %cst_16 = arith.constant dense<0.000000e+00> : vector<8x128xf32>
    %44 = tpu.matmul %43, %42, %cst_16 {dimension_numbers = #tpu.dot_dimension_numbers<[1], [0], [0], [1], [0, 0, 1, 1], [], []>} : vector<8x128xbf16>, vector<128x128xbf16>, vector<8x128xf32> -> vector<8x128xf32>
    %45 = vector.extract_strided_slice %1 {offsets = [4, 0], sizes = [1, 128], strides = [1, 1]} : vector<6x128xf32> to vector<1x128xf32>
    %46 = vector.shape_cast %45 : vector<1x128xf32> to vector<128xf32>
    %47 = vector.shape_cast %46 : vector<128xf32> to vector<1x128xf32>
    %48 = vector.broadcast %47 : vector<1x128xf32> to vector<8x128xf32>
    %49 = arith.addf %44, %48 : vector<8x128xf32>
    %cst_17 = arith.constant 0.000000e+00 : f32
    %50 = vector.broadcast %cst_17 : f32 to vector<8x128xf32>
    %51 = arith.maximumf %49, %50 : vector<8x128xf32>
    %c544 = arith.constant 544 : index
    %c0_18 = arith.constant 0 : index
    %52 = vector.load %arg2[%c544, %c0_18] : memref<672x128xbf16, #tpu.memory_space<vmem>>, vector<128x128xbf16>
    %53 = arith.truncf %51 : vector<8x128xf32> to vector<8x128xbf16>
    %cst_19 = arith.constant dense<0.000000e+00> : vector<8x128xf32>
    %54 = tpu.matmul %53, %52, %cst_19 {dimension_numbers = #tpu.dot_dimension_numbers<[1], [0], [0], [1], [0, 0, 1, 1], [], []>} : vector<8x128xbf16>, vector<128x128xbf16>, vector<8x128xf32> -> vector<8x128xf32>
    %55 = vector.extract_strided_slice %1 {offsets = [5, 0], sizes = [1, 128], strides = [1, 1]} : vector<6x128xf32> to vector<1x128xf32>
    %56 = vector.shape_cast %55 : vector<1x128xf32> to vector<128xf32>
    %57 = vector.shape_cast %56 : vector<128xf32> to vector<1x128xf32>
    %58 = vector.broadcast %57 : vector<1x128xf32> to vector<8x128xf32>
    %59 = arith.addf %54, %58 : vector<8x128xf32>
    %60 = vector.extract_strided_slice %59 {offsets = [0, 0], sizes = [8, 1], strides = [1, 1]} : vector<8x128xf32> to vector<8x1xf32>
    %c0_20 = arith.constant 0 : index
    %c0_21 = arith.constant 0 : index
    %61 = vector.load %arg4[%c0_20, %c0_21] : memref<8x1xf32, #tpu.memory_space<vmem>>, vector<8x1xf32>
    tpu.vector_store %arg4[%c0_20, %c0_21], %60 {strides = array<i32>} : memref<8x1xf32, #tpu.memory_space<vmem>>, vector<8x1xf32>,
    return
  }
  func.func @transform_0(%arg0: i32) -> (i32, i32) {
    %c0_i32 = arith.constant 0 : i32
    %c0_i32_0 = arith.constant 0 : i32
    return %arg0, %c0_i32 : i32, i32
  }
  func.func @transform_1(%arg0: i32) -> (i32, i32) {
    %c0_i32 = arith.constant 0 : i32
    %c0_i32_0 = arith.constant 0 : i32
    %c0_i32_1 = arith.constant 0 : i32
    return %c0_i32, %c0_i32_0 : i32, i32
  }
  func.func @transform_2(%arg0: i32) -> (i32, i32) {
    %c0_i32 = arith.constant 0 : i32
    %c0_i32_0 = arith.constant 0 : i32
    %c0_i32_1 = arith.constant 0 : i32
    return %c0_i32, %c0_i32_0 : i32, i32
  }
  func.func @transform_3(%arg0: i32) -> (i32, i32) {
    %c0_i32 = arith.constant 0 : i32
    %c0_i32_0 = arith.constant 0 : i32
    return %arg0, %c0_i32 : i32, i32
  }
}

</mosaic_0001>

<bundles_post_ra>
// kernel: tpu_custom_call.1
= control target key start
LH: loop header
LB: loop body
LE: loop exit
PB: predicated region body
PF: predicated region fallthrough
CT: control target
= control target key end

     0   :  { %8 = vsyncpa [#allocation3], 0  ;;  %s1581_s0 = inlined_call_operand.hbm [shape: f32[32,32], index: 0, kind: input, shape index: {}]   ;;  %s1582_s1 = inlined_call_operand.hbm [shape: bf16[672,128], index: 1, kind: input, shape index: {}]   ;;  %s1583_s2 = inlined_call_operand.hbm [shape: f32[6,128], index: 2, kind: input, shape index: {}]   ;;  %s1584_s3 = inlined_call_operand.vmem [shape: f32[32,1], index: 3, kind: output, shape index: {}]  }
   0x1   :  { %10 = vsyncpa [#allocation3 + $0x1], 0 }
   0x2   :  { %11 = vsyncpa [#allocation5], 0  ;;  %s1383_s12 = smov 0   ;;  %s1385_s13 = smov 0  }
   0x3   :  { %s1387_s14 = smov 0   ;;  %s1389_s15 = smov 0  }
   0x4 LB: > { %s1402_s16 = sadd.s32 4294967295, %s1354_s15   ;;  %p37_p0 = scmp.ne.s32.totalorder %s1346_s13, %s1342_s12  ;;  %s1354_s15 = sphi %s1389_s15, %s1599_s15   ;;  %s1350_s14 = sphi %s1387_s14, %s1598_s14   ;;  %s1346_s13 = sphi %s1385_s13, %s1597_s13   ;;  %s1342_s12 = sphi %s1383_s12, %s1596_s12  }
   0x5   : > { %p1585_p1 = scmp.eq.s32.totalorder %s1402_s16, 0  ;;  %p918_p2 = scmp.ge.s32.totalorder %s1354_s15, 1 }
   0x6   : > { %p116_p3 = scmp.lt.s32.totalorder %s1354_s15, 5  ;;  %s1356_s19 = smov [#allocation4]  }
   0x7   : > { %p1410_p4 = por %p1585_p1, %p37_p0  ;;  %s128_s20 = sshll.u32 %s1356_s19, 4  ;;  %s129_s20 = int_to_ptr.vmem [resolvable:$true] %s128_s20 }
   0x8   : > { %p1414_p5 = pnand %p918_p2, %p116_p3  ;;  %s1357_s22 = smov [#allocation6]  }
   0x9   : > { %s1588_s17 = scalar_select %p1410_p4, 1, 0 }
   0xa   : > { %s1589_s18 = scalar_select %p1414_p5, 1, 0 }
   0xb   : > { %p1140_p6 = pneg %p1414_p5  ;;  %s142_s23 = sshll.u32 %s1357_s22, 4  ;;  %s143_s23 = int_to_ptr.vmem [resolvable:$true] %s142_s23 }
   0xc   : > { %s1247_s24 = scalar_lea.vmem %s129_s20, 5376  ;;  %p1255_p12 = scmp.lt.s32.totalorder %s129_s20, %s129_s20 }
   0xd   : > { %p1422_p7 = pnand %p1140_p6, %p1585_p1  ;;  %p1248_p9 = scmp.ne.s32.totalorder %s129_s20, %s1247_s24 }
   0xe   : > { %p1256_p13 = scmp.lt.s32.totalorder %s1247_s24, %s1247_s24 }
   0xf   : > { %p1238_p8 = pneg %p1422_p7 }
  0x10   : > { %p1257_p0 = por %p1256_p13, %p1255_p12 }
  0x11   : > { %p1250_p10 = pnand %p1248_p9, %p1238_p8 }
  0x13   : > { %p1251_p11 = pneg %p1250_p10 }
  0x15   : > { %p1258_p2 = pnand %p1257_p0, %p1251_p11 }
  0x17   : > { %1261 = shalt.err (!%p1258_p2)
}
  0x18   : > { %s1358_s25 = smov 64   ;;  %s1359_s26 = smov 4  }
  0x19   : > { %1143 = dma.hbm_to_vmem [thread:$0]  (!%p1422_p7), %s1582_s1, 5376, %s129_s20, [#allocation5], %s1358_s25, %s1358_s25, %s1359_s26  }
  0x1a   : > { %s1273_s29 = scalar_lea.vmem %s143_s23, 128  ;;  %p1281_p10 = scmp.lt.s32.totalorder %s143_s23, %s143_s23 }
  0x1b   : > { %p1274_p3 = scmp.ne.s32.totalorder %s143_s23, %s1273_s29  ;;  %p1282_p1 = scmp.lt.s32.totalorder %s1273_s29, %s1273_s29 }
  0x1d   : > { %p1276_p6 = pnand %p1274_p3, %p1238_p8  ;;  %p1283_p12 = por %p1282_p1, %p1281_p10 }
  0x1f   : > { %p1277_p9 = pneg %p1276_p6 }
  0x21   : > { %p1284_p11 = pnand %p1283_p12, %p1277_p9 }
  0x23   : > { %1287 = shalt.err (!%p1284_p11)
}
  0x24   : > { %1146 = dma.hbm_to_vmem [thread:$0]  (!%p1422_p7), %s1583_s2, 128, %s143_s23, [#allocation5]  }
  0x25   : > { %s1445_s5 = sadd.s32 1, %s1354_s15   ;;  %s24_s6 = sadd.s32 1, %s1350_s14 }
  0x26   : > { %s21_s7 = ssub.s32 %s1354_s15, %s1445_s5  ;;  %p31_p1 = scmp.ne.s32.totalorder %s1350_s14, %s1346_s13 }
  0x27   : > { %p22_p8 = scmp.eq.s32.totalorder %s21_s7, 0  ;;  %p32_p13 = scmp.eq.s32.totalorder %s1354_s15, 0 }
  0x28   : > { %p1153_p0 = scmp.lt.s32.totalorder %s1354_s15, 4  ;;  %s153_s8 = sand.u32 1, %s1350_s14  }
  0x29   : > { %s1456_s9 = scalar_select %p22_p8, %s1350_s14, %s24_s6  }
  0x2a   : > { %p33_p2 = por %p32_p13, %p31_p1  ;;  %s922_s10 = sshll.u32 %s153_s8, 3 }
  0x2b   : > { %s923_s11 = sshll.u32 %s1354_s15, 7  ;;  %s157_s21 = scalar_lea.vmem [#allocation2], %s922_s10 }
  0x2c   : > { %s1462_s20 = scalar_lea.hbm %s1581_s0, %s923_s11  ;;  %s164_s22 = sshll.u32 %s157_s21, 4  ;;  %s165_s22 = int_to_ptr.vmem [resolvable:$true] %s164_s22 }
  0x2d   : > { %p1464_p7 = pnand %p1153_p0, %p33_p2  ;;  %s154_s24 = scalar_lea.sflag [#allocation3], %s153_s8 }
  0x2e   : > { %s1288_s25 = scalar_lea.hbm %s1462_s20, 128  ;;  %s1293_s27 = scalar_lea.hbm %s1581_s0, 512 }
  0x2f   : > { %p1289_p3 = scmp.ne.s32.totalorder %s1462_s20, %s1288_s25  ;;  %p1290_p6 = pneg %p1464_p7 }
  0x30   : > { %p1294_p12 = scmp.lt.s32.totalorder %s1462_s20, %s1581_s0  ;;  %p1295_p11 = scmp.lt.s32.totalorder %s1293_s27, %s1288_s25 }
  0x31   : > { %p1291_p9 = pnand %p1290_p6, %p1289_p3 }
  0x32   : > { %p1296_p1 = por %p1295_p11, %p1294_p12 }
  0x33   : > { %p1292_p10 = pneg %p1291_p9 }
  0x35   : > { %p1297_p8 = pnand %p1296_p1, %p1292_p10 }
  0x37   : > { %1300 = shalt.err (!%p1297_p8)
}
  0x38   : > { %s1301_s30 = scalar_lea.vmem %s165_s22, 128  ;;  %s1360_s4 = smov [#allocation2]  }
  0x39   : > { %p1302_p13 = scmp.ne.s32.totalorder %s165_s22, %s1301_s30  ;;  %s1306_s6 = sshll.u32 %s1360_s4, 4  ;;  %s1307_s6 = int_to_ptr.vmem [resolvable:$false] %s1306_s6 }
  0x3a   : > { %s1308_s7 = scalar_lea.vmem %s1307_s6, 256  ;;  %p1309_p3 = scmp.lt.s32.totalorder %s165_s22, %s1307_s6 }
  0x3b   : > { %p1304_p0 = pnand %p1302_p13, %p1290_p6  ;;  %p1310_p9 = scmp.lt.s32.totalorder %s1308_s7, %s1301_s30 }
  0x3d   : > { %p1305_p2 = pneg %p1304_p0  ;;  %p1311_p4 = por %p1310_p9, %p1309_p3 }
  0x3f   : > { %p1312_p5 = pnand %p1311_p4, %p1305_p2 }
  0x41   : > { %1315 = shalt.err (!%p1312_p5)
}
  0x42   : > { %1150 = dma.hbm_to_vmem [thread:$0]  (!%p1464_p7), %s1462_s20, 128, %s165_s22, %s154_s24  }
  0x43   : > { %p1592_p10 = scmp.ne.s32.totalorder %s1589_s18, 0 }
  0x44   : > { %s175_s8 = sand.u32 (!%p1592_p10), 1, %s1346_s13   ;;  %p1593_p6 = scmp.ne.s32.totalorder (!%p1592_p10), %s1588_s17, 0 }
  0x45   : > { %173 = sbr.rel (%p1592_p10) target bundleno = 1282 (0x502), region = 32  ;;  %s925_s10 = sshll.u32 (!%p1592_p10), %s175_s8, 3 }
  0x46   : > { %s176_s11 = scalar_lea.sflag (!%p1592_p10), [#allocation3], %s175_s8  ;;  %s179_s12 = scalar_lea.vmem (!%p1592_p10), [#allocation2], %s925_s10 }
  0x4a   : > { %1333 = dma.done.wait (%p1593_p6), %s176_s11, 128  }
  0x4b   : > { %1335 = vsyncadd (%p1593_p6), %s176_s11, 4294967168  ;;  %p1594_p4 = scmp.eq.s32.totalorder %s1402_s16, 0 }
  0x4d   : > { %1337 = dma.done.wait (%p1594_p4), [#allocation5], 5504   ;;  %p1595_p5 = pmov %p1594_p4 }
  0x4e   : > { %v1361_v0 = vmov 0.0   ;;  %vm1362_vm0 = vmmov 0   ;;  %v1194_v1 = vld [vmem:[#allocation4 + $0x8] sm:$0xff]   ;;  %v1195_v2 = vld [vmem:[#allocation4] sm:$0xff]   ;;  %v214_v3 = vld [vmem:[%s179_s12] sm:$0xff]  ;;  %vm237_vm1 = vcmask 261120   ;;  %v221_v19 = vlaneseq }
  0x4f   : > { %1339 = vsyncadd (%p1595_p5), [#allocation5], 4294961792  ;;  %1022 = vmatprep.subr.bf16.mxu0 %v1361_v0  ;;  %1026 = vmatprep.mubr.msk.bf16.mxu0 %vm1362_vm0, %v1361_v0  ;;  %v1196_v4 = vld [vmem:[#allocation4 + $0x48] sm:$0xff]   ;;  %v220_v5 = vpack.c.bf16 %v214_v3, %v214_v3  ;;  %v1197_v6 = vld [vmem:[#allocation4 + $0x40] sm:$0xff]   ;;  %p209_p7 = scmp.lt.s32.totalorder %s1402_s16, 3  ;;  %vm831_vm2 = vcmask 7168  }
  0x50   : > { %1030 = vmatprep.subr.bf16.mxu1 %v1361_v0  ;;  %1046 = vmatprep.mubr.msk.bf16.mxu1 %vm1362_vm0, %v1361_v0  ;;  %v1198_v7 = vld [vmem:[#allocation4 + $0x38] sm:$0xff]   ;;  %v1199_v8 = vld [vmem:[#allocation4 + $0x30] sm:$0xff]   ;;  %v1200_v9 = vld [vmem:[#allocation4 + $0x28] sm:$0xff]   ;;  %v1517_v20 = vshrl.u32 %v221_v19, 7 }
  0x51   : > { %1023 = vmatpush3.bf16.msra.mxu0 %v1194_v1  ;;  %1031 = vmatpush3.bf16.msra.mxu1 %v1196_v4  ;;  %v1201_v10 = vld [vmem:[#allocation4 + $0x20] sm:$0xff]   ;;  %v1202_v11 = vld [vmem:[#allocation4 + $0x18] sm:$0xff]   ;;  %v1203_v12 = vld [vmem:[#allocation4 + $0x10] sm:$0xff]   ;;  %s1601_s16 = smov (!%p209_p7, %s1402_s16), 3 }
  0x52   : > { %1024 = vmatprep.subr.bf16.mxu0 %v1361_v0  ;;  %1032 = vmatprep.subr.bf16.mxu1 %v1361_v0  ;;  %v1204_v13 = vld [vmem:[#allocation4 + $0x88] sm:$0xff]   ;;  %v1205_v14 = vld [vmem:[#allocation4 + $0x80] sm:$0xff]   ;;  %v1206_v15 = vld [vmem:[#allocation4 + $0x78] sm:$0xff]   ;;  %v223_v21 = vsub.s32 0, %v1517_v20  ;;  %v301_v39 = vsub.s32 1, %v1517_v20  ;;  %v411_v56 = vsub.s32 2, %v1517_v20 }
  0x53   : > { %v1207_v16 = vld [vmem:[#allocation4 + $0x70] sm:$0xff]   ;;  %v1208_v17 = vld [vmem:[#allocation4 + $0x68] sm:$0xff]   ;;  %v1209_v18 = vld [vmem:[#allocation4 + $0x60] sm:$0xff]   ;;  %s928_s17 = sshll.u32 %s1601_s16, 3 }
  0x54   : > { %v1520_v22 = vld [vmem:[#allocation6] sm:$0x3f]  ;;  %v1210_v31 = vld [vmem:[#allocation4 + $0x58] sm:$0xff]   ;;  %v1212_v33 = vld [vmem:[#allocation4 + $0xc8] sm:$0xff]   ;;  %s212_s20 = scalar_lea.vmem %s1584_s3, %s928_s17 }
  0x55   : > { %1025 = vmatpush3.bf16.msra.mxu0 %v1195_v2  ;;  %1033 = vmatpush3.bf16.msra.mxu1 %v1197_v6  ;;  %v224_v23 = vrot.slane %v1520_v22, %v223_v21  ;;  %v1211_v32 = vld [vmem:[#allocation4 + $0x50] sm:$0xff]   ;;  %v1213_v34 = vld [vmem:[#allocation4 + $0xc0] sm:$0xff]   ;;  %v1214_v35 = vld [vmem:[#allocation4 + $0xb8] sm:$0xff]   ;;  %v302_v40 = vrot.slane %v1520_v22, %v301_v39  ;;  %v412_v57 = vrot.slane %v1520_v22, %v411_v56 }
  0x56   : > { %1050 = vmatprep.subr.bf16.mxu0 %v1361_v0  ;;  %1034 = vmatprep.subr.bf16.mxu1 %v1361_v0  ;;  %v1215_v36 = vld [vmem:[#allocation4 + $0xb0] sm:$0xff]   ;;  %v1216_v37 = vld [vmem:[#allocation4 + $0xa8] sm:$0xff]   ;;  %v1217_v38 = vld [vmem:[#allocation4 + $0xa0] sm:$0xff]  }
  0x57   : > { %v1218_v48 = vld [vmem:[#allocation4 + $0x98] sm:$0xff]   ;;  %v1219_v49 = vld [vmem:[#allocation4 + $0x90] sm:$0xff]   ;;  %v1220_v50 = vld [vmem:[#allocation4 + $0x108] sm:$0xff]  }
  0x58   : > { %1027 = vmatmul.mubr.msk.bf16.vlgmr.msra.gmra.mxu0 %vm237_vm1, %v220_v5  ;;  %v1221_v51 = vld [vmem:[#allocation4 + $0x100] sm:$0xff]   ;;  %v1222_v52 = vld [vmem:[#allocation4 + $0xf8] sm:$0xff]   ;;  %v1223_v53 = vld [vmem:[#allocation4 + $0xf0] sm:$0xff]  }
  0x59   : > { %1066 = vmatprep.mubr.msk.bf16.mxu0 %vm1362_vm0, %v1361_v0  ;;  %1035 = vmatpush3.bf16.msra.mxu1 %v1198_v7  ;;  %v1224_v54 = vld [vmem:[#allocation4 + $0xe8] sm:$0xff]   ;;  %v1225_v55 = vld [vmem:[#allocation4 + $0xe0] sm:$0xff]   ;;  %v1226_v2 = vld [vmem:[#allocation4 + $0xd8] sm:$0xff]  }
  0x5a   : > { %1036 = vmatprep.subr.bf16.mxu1 %v1361_v0  ;;  %1051 = vmatpush3.bf16.msra.mxu0 %v1204_v13  ;;  %v1227_v3 = vld [vmem:[#allocation4 + $0xd0] sm:$0xff]   ;;  %v1228_v4 = vld [vmem:[#allocation4 + $0x148] sm:$0xff]   ;;  %v1229_v5 = vld [vmem:[#allocation4 + $0x140] sm:$0xff]  }
  0x5b   : > { %1052 = vmatprep.subr.bf16.mxu0 %v1361_v0  ;;  %v1230_v6 = vld [vmem:[#allocation4 + $0x138] sm:$0xff]   ;;  %v1231_v7 = vld [vmem:[#allocation4 + $0x130] sm:$0xff]  }
  0x5c   : > { %v1234_v19 = vld [vmem:[#allocation4 + $0x118] sm:$0xff]   ;;  %v1235_v21 = vld [vmem:[#allocation4 + $0x110] sm:$0xff]  }
  0x5d   : > { %1037 = vmatpush3.bf16.msra.mxu1 %v1199_v8  ;;  %v1232_v8 = vld [vmem:[#allocation4 + $0x128] sm:$0xff]  }
  0x5e   : > { %1038 = vmatprep.subr.bf16.mxu1 %v1361_v0  ;;  %1053 = vmatpush3.bf16.msra.mxu0 %v1205_v14 }
  0x5f   : > { %1054 = vmatprep.subr.bf16.mxu0 %v1361_v0 }
  0x61   : > { %1039 = vmatpush3.bf16.msra.mxu1 %v1200_v9  ;;  %v1233_v9 = vld [vmem:[#allocation4 + $0x120] sm:$0xff]  }
  0x62   : > { %1040 = vmatprep.subr.bf16.mxu1 %v1361_v0  ;;  %1055 = vmatpush3.bf16.msra.mxu0 %v1206_v15 }
  0x63   : > { %1056 = vmatprep.subr.bf16.mxu0 %v1361_v0 }
  0x65   : > { %1041 = vmatpush3.bf16.msra.mxu1 %v1201_v10  ;;  %v521_v10 = vsub.s32 3, %v1517_v20 }
  0x66   : > { %1042 = vmatprep.subr.bf16.mxu1 %v1361_v0  ;;  %1057 = vmatpush3.bf16.msra.mxu0 %v1207_v16 }
  0x67   : > { %1058 = vmatprep.subr.bf16.mxu0 %v1361_v0 }
  0x69   : > { %1043 = vmatpush3.bf16.msra.mxu1 %v1202_v11  ;;  %v522_v11 = vrot.slane %v1520_v22, %v521_v10 }
  0x6a   : > { %1044 = vmatprep.subr.bf16.mxu1 %v1361_v0  ;;  %1059 = vmatpush3.bf16.msra.mxu0 %v1208_v17 }
  0x6b   : > { %1060 = vmatprep.subr.bf16.mxu0 %v1361_v0 }
  0x6d   : > { %1045 = vmatpush3.bf16.msra.mxu1 %v1203_v12 }
  0x6e   : > { %1070 = vmatprep.subr.bf16.mxu1 %v1361_v0  ;;  %1061 = vmatpush3.bf16.msra.mxu0 %v1209_v18 }
  0x6f   : > { %1062 = vmatprep.subr.bf16.mxu0 %v1361_v0 }
  0x72   : > { %1063 = vmatpush3.bf16.msra.mxu0 %v1210_v31 }
  0x73   : > { %1064 = vmatprep.subr.bf16.mxu0 %v1361_v0 }
  0x76   : > { %1065 = vmatpush3.bf16.msra.mxu0 %v1211_v32  ;;  %v741_v32 = vsub.s32 5, %v1517_v20 }
  0x77   : > { %1090 = vmatprep.subr.bf16.mxu0 %v1361_v0 }
 0x118   : > { %v275_v24 = vpop.f32.mrf.mxu0 }
 0x119   : > { %v276_v25 = vadd.f32 %v275_v24, %v224_v23  ;;  %v631_v23 = vsub.s32 4, %v1517_v20 }
 0x11a   : > { %v1028_v26 = vpop.f32.mrf.mxu0 }
 0x11b   : > { %v281_v27 = vmax.f32 %v276_v25, 0.0  ;;  %v632_v24 = vrot.slane %v1520_v22, %v631_v23 }
 0x11c   : > { %v278_v28 = vpop.f32.mrf.mxu0 }
 0x11d   : > { %v298_v29 = vpack.c.bf16 %v281_v27, %v281_v27 }
 0x11e   : > { %v1029_v30 = vpop.f32.mrf.mxu0 }
 0x11f   : > { %1047 = vmatmul.mubr.bf16.vlgmr.msra.gmra.mxu1 %v298_v29 }
 0x120   : > { %1086 = vmatprep.mubr.msk.bf16.mxu1 %vm1362_vm0, %v1361_v0  ;;  %1071 = vmatpush3.bf16.msra.mxu1 %v1212_v33 }
 0x121   : > { %1072 = vmatprep.subr.bf16.mxu1 %v1361_v0 }
 0x124   : > { %1073 = vmatpush3.bf16.msra.mxu1 %v1213_v34 }
 0x125   : > { %1074 = vmatprep.subr.bf16.mxu1 %v1361_v0 }
 0x128   : > { %1075 = vmatpush3.bf16.msra.mxu1 %v1214_v35 }
 0x129   : > { %1076 = vmatprep.subr.bf16.mxu1 %v1361_v0 }
 0x12c   : > { %1077 = vmatpush3.bf16.msra.mxu1 %v1215_v36 }
 0x12d   : > { %1078 = vmatprep.subr.bf16.mxu1 %v1361_v0 }
 0x130   : > { %1079 = vmatpush3.bf16.msra.mxu1 %v1216_v37 }
 0x131   : > { %1080 = vmatprep.subr.bf16.mxu1 %v1361_v0 }
 0x134   : > { %1081 = vmatpush3.bf16.msra.mxu1 %v1217_v38 }
 0x135   : > { %1082 = vmatprep.subr.bf16.mxu1 %v1361_v0 }
 0x138   : > { %1083 = vmatpush3.bf16.msra.mxu1 %v1218_v48 }
 0x139   : > { %1084 = vmatprep.subr.bf16.mxu1 %v1361_v0 }
 0x13c   : > { %1085 = vmatpush3.bf16.msra.mxu1 %v1219_v49 }
 0x13d   : > { %1110 = vmatprep.subr.bf16.mxu1 %v1361_v0 }
 0x1df   : > { %v385_v41 = vpop.f32.mrf.mxu1 }
 0x1e0   : > { %v386_v42 = vadd.f32 %v385_v41, %v302_v40 }
 0x1e1   : > { %v1048_v43 = vpop.f32.mrf.mxu1 }
 0x1e2   : > { %v391_v44 = vmax.f32 %v386_v42, 0.0 }
 0x1e3   : > { %v388_v45 = vpop.f32.mrf.mxu1 }
 0x1e4   : > { %v408_v46 = vpack.c.bf16 %v391_v44, %v391_v44 }
 0x1e5   : > { %v1049_v47 = vpop.f32.mrf.mxu1 }
 0x1e6   : > { %1067 = vmatmul.mubr.bf16.vlgmr.msra.gmra.mxu0 %v408_v46 }
 0x1e7   : > { %1106 = vmatprep.mubr.msk.bf16.mxu0 %vm1362_vm0, %v1361_v0  ;;  %1091 = vmatpush3.bf16.msra.mxu0 %v1220_v50 }
 0x1e8   : > { %1092 = vmatprep.subr.bf16.mxu0 %v1361_v0 }
 0x1eb   : > { %1093 = vmatpush3.bf16.msra.mxu0 %v1221_v51 }
 0x1ec   : > { %1094 = vmatprep.subr.bf16.mxu0 %v1361_v0 }
 0x1ef   : > { %1095 = vmatpush3.bf16.msra.mxu0 %v1222_v52 }
 0x1f0   : > { %1096 = vmatprep.subr.bf16.mxu0 %v1361_v0 }
 0x1f3   : > { %1097 = vmatpush3.bf16.msra.mxu0 %v1223_v53 }
 0x1f4   : > { %1098 = vmatprep.subr.bf16.mxu0 %v1361_v0 }
 0x1f7   : > { %1099 = vmatpush3.bf16.msra.mxu0 %v1224_v54 }
 0x1f8   : > { %1100 = vmatprep.subr.bf16.mxu0 %v1361_v0 }
 0x1fb   : > { %1101 = vmatpush3.bf16.msra.mxu0 %v1225_v55 }
 0x1fc   : > { %1102 = vmatprep.subr.bf16.mxu0 %v1361_v0 }
 0x1ff   : > { %1103 = vmatpush3.bf16.msra.mxu0 %v1226_v2 }
 0x200   : > { %1104 = vmatprep.subr.bf16.mxu0 %v1361_v0 }
 0x203   : > { %1105 = vmatpush3.bf16.msra.mxu0 %v1227_v3 }
 0x2a6   : > { %v495_v58 = vpop.f32.mrf.mxu0 }
 0x2a7   : > { %v496_v59 = vadd.f32 %v495_v58, %v412_v57 }
 0x2a8   : > { %v1068_v60 = vpop.f32.mrf.mxu0 }
 0x2a9   : > { %v501_v61 = vmax.f32 %v496_v59, 0.0 }
 0x2aa   : > { %v498_v62 = vpop.f32.mrf.mxu0 }
 0x2ab   : > { %v518_v63 = vpack.c.bf16 %v501_v61, %v501_v61 }
 0x2ac   : > { %v1069_v1 = vpop.f32.mrf.mxu0 }
 0x2ad   : > { %1087 = vmatmul.mubr.bf16.vlgmr.msra.gmra.mxu1 %v518_v63 }
 0x2ae   : > { %1126 = vmatprep.mubr.msk.bf16.mxu1 %vm1362_vm0, %v1361_v0  ;;  %1111 = vmatpush3.bf16.msra.mxu1 %v1228_v4 }
 0x2af   : > { %1112 = vmatprep.subr.bf16.mxu1 %v1361_v0 }
 0x2b2   : > { %1113 = vmatpush3.bf16.msra.mxu1 %v1229_v5 }
 0x2b3   : > { %1114 = vmatprep.subr.bf16.mxu1 %v1361_v0 }
 0x2b6   : > { %1115 = vmatpush3.bf16.msra.mxu1 %v1230_v6 }
 0x2b7   : > { %1116 = vmatprep.subr.bf16.mxu1 %v1361_v0 }
 0x2ba   : > { %1117 = vmatpush3.bf16.msra.mxu1 %v1231_v7 }
 0x2bb   : > { %1118 = vmatprep.subr.bf16.mxu1 %v1361_v0 }
 0x2be   : > { %1119 = vmatpush3.bf16.msra.mxu1 %v1232_v8 }
 0x2bf   : > { %1120 = vmatprep.subr.bf16.mxu1 %v1361_v0 }
 0x2c2   : > { %1121 = vmatpush3.bf16.msra.mxu1 %v1233_v9 }
 0x2c3   : > { %1122 = vmatprep.subr.bf16.mxu1 %v1361_v0 }
 0x2c6   : > { %1123 = vmatpush3.bf16.msra.mxu1 %v1234_v19 }
 0x2c7   : > { %1124 = vmatprep.subr.bf16.mxu1 %v1361_v0  ;;  %v742_v0 = vrot.slane %v1520_v22, %v741_v32 }
 0x2ca   : > { %1125 = vmatpush3.bf16.msra.mxu1 %v1235_v21 }
 0x36d   : > { %v605_v12 = vpop.f32.mrf.mxu1 }
 0x36e   : > { %v606_v13 = vadd.f32 %v605_v12, %v522_v11 }
 0x36f   : > { %v1088_v14 = vpop.f32.mrf.mxu1 }
 0x370   : > { %v611_v15 = vmax.f32 %v606_v13, 0.0 }
 0x371   : > { %v608_v16 = vpop.f32.mrf.mxu1 }
 0x372   : > { %v628_v17 = vpack.c.bf16 %v611_v15, %v611_v15 }
 0x373   : > { %v1089_v18 = vpop.f32.mrf.mxu1 }
 0x374   : > { %1107 = vmatmul.mubr.bf16.vlgmr.msra.gmra.mxu0 %v628_v17 }
 0x434   : > { %v715_v25 = vpop.f32.mrf.mxu0 }
 0x435   : > { %v716_v26 = vadd.f32 %v715_v25, %v632_v24 }
 0x436   : > { %v1108_v27 = vpop.f32.mrf.mxu0 }
 0x437   : > { %v721_v28 = vmax.f32 %v716_v26, 0.0 }
 0x438   : > { %v718_v29 = vpop.f32.mrf.mxu0 }
 0x439   : > { %v738_v30 = vpack.c.bf16 %v721_v28, %v721_v28 }
 0x43a   : > { %v1109_v31 = vpop.f32.mrf.mxu0 }
 0x43b   : > { %1127 = vmatmul.mubr.bf16.vlgmr.msra.gmra.mxu1 %v738_v30 }
 0x4fb   : > { %v825_v33 = vpop.f32.mrf.mxu1 }
 0x4fc   : > { %v826_v34 = vadd.f32 %v825_v33, %v742_v0 }
 0x4fd   : > { %v1128_v35 = vpop.f32.mrf.mxu1 }
 0x4fe   : > { %832 = vst.msk [vmem:[%s212_s20] sm:$0xff] %vm831_vm2, %v826_v34 }
 0x4ff   : > { %v828_v36 = vpop.f32.mrf.mxu1 }
 0x501   : > { %v1129_v37 = vpop.f32.mrf.mxu1 }
 0x502 PF: > { %p14_p12 = scmp.ge.s32.totalorder %s1445_s5, 6   ;;  %s1596_s12 = smov %s1346_s13 }
 0x503   : > { %s1597_s13 = smov %s1350_s14  ;;  %s1598_s14 = smov %s1456_s9 }
 0x504   : > { %s1599_s15 = smov %s1445_s5  ;;  %16 = sbr.rel (!%p14_p12) target bundleno = 4 (0x4), region = 80 }
 0x509   :  { %852 = vsyncpa [#allocation3], 1 }
 0x50a   :  { %854 = vsyncpa [#allocation3 + $0x1], 1 }
 0x50b   :  { %855 = vsyncpa [#allocation5], 1 }

</bundles_post_ra>
